<compile_context>
chip_gen: v6e
topology: v6e:2x2x1
jax: 0.10.0
libtpu: 0.0.40
codegen_flags: <defaults>
</compile_context>

<pallas_src>
import functools

import jax
import jax.numpy as jnp
from jax.experimental import pallas as pl
from jax.experimental.pallas import tpu as pltpu

_VMEM = pl.BlockSpec(memory_space=pltpu.MemorySpace.VMEM)
_VMEM_LIMIT = 64 * 1024 * 1024
_BN_EPS = 1e-3  # torchvision efficientnet uses BatchNorm2d(eps=1e-3)

# (expand_ratio, kernel, stride, in_ch, out_ch, num_layers)  -- EfficientNet-B0
_CFG = [
    (1, 3, 1, 32, 16, 1),
    (6, 3, 2, 16, 24, 2),
    (6, 5, 2, 24, 40, 2),
    (6, 3, 2, 40, 80, 3),
    (6, 5, 1, 80, 112, 3),
    (6, 5, 2, 112, 192, 4),
    (6, 3, 1, 192, 320, 1),
]


def _pad_c(c):
    """Lane-dense channel padding: sub-128 channel counts padded to 128."""
    return 128 if c < 128 else c


# ----------------------------- in-kernel helpers -----------------------------
def _silu(y):
    # reciprocal on the EUP slot instead of a VALU divide
    return y * pl.reciprocal(1.0 + jnp.exp(-y), approx=True)


def _sigmoid(y):
    return pl.reciprocal(1.0 + jnp.exp(-y), approx=True)


def _apply_act(y, act):
    if act == "silu":
        return _silu(y)
    if act == "sigmoid":
        return _sigmoid(y)
    return y


# --------------------- 1x1 conv / linear (row-tiled matmul) ------------------
def _mm_kernel(act, x_ref, w_ref, s_ref, b_ref, o_ref):
    y = jnp.dot(x_ref[...], w_ref[...], preferred_element_type=jnp.float32)
    y = _apply_act(y * s_ref[...] + b_ref[...], act)
    o_ref[...] = y.astype(o_ref.dtype)


def pw_conv(x2d, w, scale, bias, act="none", out_dtype=jnp.bfloat16, tm=512):
    """act((x @ w) * scale + bias) with a grid over the row dimension."""
    m, cin = x2d.shape
    cout = w.shape[1]
    tm = min(tm, m)
    return pl.pallas_call(
        functools.partial(_mm_kernel, act),
        out_shape=jax.ShapeDtypeStruct((m, cout), out_dtype),
        grid=(pl.cdiv(m, tm),),
        in_specs=[
            pl.BlockSpec((tm, cin), lambda i: (i, 0)),
            pl.BlockSpec((cin, cout), lambda i: (0, 0)),   # weights stay resident
            pl.BlockSpec((1, cout), lambda i: (0, 0)),
            pl.BlockSpec((1, cout), lambda i: (0, 0)),
        ],
        out_specs=pl.BlockSpec((tm, cout), lambda i: (i, 0)),
        compiler_params=pltpu.CompilerParams(
            dimension_semantics=("parallel",), vmem_limit_bytes=_VMEM_LIMIT),
    )(x2d, w, scale.reshape(1, cout), bias.reshape(1, cout))


# ------------- depthwise conv + BN + SiLU + SE average pool (fused) ----------
def _dw_kernel(k, s, ho, wo, x_ref, w_ref, s_ref, b_ref, y_ref, p_ref):
    c = x_ref.shape[-1]
    acc = jnp.zeros((ho, wo, c), jnp.float32)
    for kh in range(k):
        for kw in range(k):
            pidx = (kh % s) * s + (kw % s)          # phase plane
            oh, ow = kh // s, kw // s               # contiguous offset
            tap = x_ref[pidx, oh:oh + ho, ow:ow + wo, :].astype(jnp.float32)
            wk = w_ref[kh * k + kw:kh * k + kw + 1, :].astype(jnp.float32)
            acc = acc + tap * wk
    y = _silu(acc * s_ref[...] + b_ref[...])
    y_ref[...] = y.astype(y_ref.dtype)
    # SE squeeze (global average pool) is a free by-product
    p_ref[...] = jnp.mean(y.reshape(ho * wo, c), axis=0, keepdims=True)


def dw_conv_se_pool(x4d, w, scale, bias, k, s):
    """Depthwise kxk conv (+folded BN+SiLU) fused with the SE average pool.

    No k^2 tap materialization: for stride 1 the padded image is streamed as a
    single plane; for stride 2 it is decomposed into s*s disjoint phases (same
    total size as the input) so every in-kernel tap is a contiguous slice.
    """
    n, h, w_sp, c = x4d.shape
    p = (k - 1) // 2
    ho = (h + 2 * p - k) // s + 1
    wo = (w_sp + 2 * p - k) // s + 1
    xp = jnp.pad(x4d, ((0, 0), (p, p), (p, p), (0, 0)))
    if s == 1:
        phases = xp[:, None]                                   # (n,1,Hp,Wp,c)
    else:
        hp, wp = xp.shape[1], xp.shape[2]
        xp = jnp.pad(xp, ((0, 0), (0, (-hp) % s), (0, (-wp) % s), (0, 0)))
        phases = jnp.stack(
            [xp[:, pi::s, pj::s, :] for pi in range(s) for pj in range(s)],
            axis=1)                                            # (n,s*s,Hq,Wq,c)
    nph, hq, wq = phases.shape[1], phases.shape[2], phases.shape[3]

    y, pooled = pl.pallas_call(
        functools.partial(_dw_kernel, k, s, ho, wo),
        out_shape=(jax.ShapeDtypeStruct((n, ho, wo, c), jnp.bfloat16),
                   jax.ShapeDtypeStruct((n, 1, c), jnp.float32)),
        grid=(n,),
        in_specs=[
            pl.BlockSpec((None, nph, hq, wq, c), lambda i: (i, 0, 0, 0, 0)),
            pl.BlockSpec((k * k, c), lambda i: (0, 0)),
            pl.BlockSpec((1, c), lambda i: (0, 0)),
            pl.BlockSpec((1, c), lambda i: (0, 0)),
        ],
        out_specs=(pl.BlockSpec((None, ho, wo, c), lambda i: (i, 0, 0, 0)),
                   pl.BlockSpec((None, 1, c), lambda i: (i, 0, 0))),
        compiler_params=pltpu.CompilerParams(
            dimension_semantics=("parallel",), vmem_limit_bytes=_VMEM_LIMIT),
    )(phases, w, scale.reshape(1, c), bias.reshape(1, c))
    return y, pooled.reshape(n, c), ho, wo


# ----------------------- SE MLP (both FCs in one kernel) ---------------------
def _se_kernel(p_ref, w1_ref, b1_ref, w2_ref, b2_ref, g_ref):
    p = p_ref[...].astype(jnp.bfloat16)
    h = jnp.dot(p, w1_ref[...], preferred_element_type=jnp.float32) + b1_ref[...]
    h = _silu(h)
    g = jnp.dot(h.astype(jnp.bfloat16), w2_ref[...],
                preferred_element_type=jnp.float32) + b2_ref[...]
    g_ref[...] = _sigmoid(g)


def se_mlp(pooled, w1, b1, w2, b2):
    n, c = pooled.shape
    cse = w1.shape[1]
    return pl.pallas_call(
        _se_kernel,
        out_shape=jax.ShapeDtypeStruct((n, c), jnp.float32),
        in_specs=[_VMEM] * 5,
        out_specs=_VMEM,
        compiler_params=pltpu.CompilerParams(vmem_limit_bytes=_VMEM_LIMIT),
    )(pooled, w1, b1.reshape(1, cse), w2, b2.reshape(1, c))


# ----------- SE gating + projection 1x1 conv + BN + residual (fused) ---------
def _proj_kernel(has_res, x_ref, g_ref, w_ref, s_ref, b_ref, *rest):
    if has_res:
        r_ref, o_ref = rest
    else:
        (o_ref,) = rest
    xg = (x_ref[...].astype(jnp.float32) * g_ref[...]).astype(jnp.bfloat16)
    y = jnp.dot(xg, w_ref[...], preferred_element_type=jnp.float32)
    y = y * s_ref[...] + b_ref[...]
    if has_res:
        y = y + r_ref[...].astype(jnp.float32)
    o_ref[...] = y.astype(o_ref.dtype)


def proj_conv_se(x3d, gate, w, scale, bias, residual=None, thw=512):
    n, hw, cin = x3d.shape
    cout = w.shape[1]
    thw = min(thw, hw)
    in_specs = [
        pl.BlockSpec((None, thw, cin), lambda i, j: (i, j, 0)),
        pl.BlockSpec((None, 1, cin), lambda i, j: (i, 0, 0)),   # per-image gate
        pl.BlockSpec((cin, cout), lambda i, j: (0, 0)),
        pl.BlockSpec((1, cout), lambda i, j: (0, 0)),
        pl.BlockSpec((1, cout), lambda i, j: (0, 0)),
    ]
    args = [x3d, gate.reshape(n, 1, cin), w,
            scale.reshape(1, cout), bias.reshape(1, cout)]
    if residual is not None:
        in_specs.append(pl.BlockSpec((None, thw, cout), lambda i, j: (i, j, 0)))
        args.append(residual)
    return pl.pallas_call(
        functools.partial(_proj_kernel, residual is not None),
        out_shape=jax.ShapeDtypeStruct((n, hw, cout), jnp.bfloat16),
        grid=(n, pl.cdiv(hw, thw)),
        in_specs=in_specs,
        out_specs=pl.BlockSpec((None, thw, cout), lambda i, j: (i, j, 0)),
        compiler_params=pltpu.CompilerParams(
            dimension_semantics=("parallel", "parallel"),
            vmem_limit_bytes=_VMEM_LIMIT),
    )(*args)


# -------------- head 1x1 conv + BN + SiLU + global avg pool (fused) ----------
def _head_kernel(hw, thw, x_ref, w_ref, s_ref, b_ref, o_ref):
    t = pl.program_id(1)

    @pl.when(t == 0)
    def _():
        o_ref[...] = jnp.zeros_like(o_ref)

    y = jnp.dot(x_ref[...], w_ref[...], preferred_element_type=jnp.float32)
    y = _silu(y * s_ref[...] + b_ref[...])
    rows = jax.lax.broadcasted_iota(jnp.int32, (thw, 1), 0) + t * thw
    y = jnp.where(rows < hw, y, 0.0)          # mask partial last tile
    o_ref[...] += jnp.sum(y, axis=0, keepdims=True) * (1.0 / hw)


def head_conv_pool(x3d, w, scale, bias, thw=512):
    n, hw, cin = x3d.shape
    cout = w.shape[1]
    thw = min(thw, hw)
    out = pl.pallas_call(
        functools.partial(_head_kernel, hw, thw),
        out_shape=jax.ShapeDtypeStruct((n, 1, cout), jnp.float32),
        grid=(n, pl.cdiv(hw, thw)),
        in_specs=[
            pl.BlockSpec((None, thw, cin), lambda i, j: (i, j, 0)),
            pl.BlockSpec((cin, cout), lambda i, j: (0, 0)),
            pl.BlockSpec((1, cout), lambda i, j: (0, 0)),
            pl.BlockSpec((1, cout), lambda i, j: (0, 0)),
        ],
        out_specs=pl.BlockSpec((None, 1, cout), lambda i, j: (i, 0, 0)),
        compiler_params=pltpu.CompilerParams(
            dimension_semantics=("parallel", "arbitrary"),
            vmem_limit_bytes=_VMEM_LIMIT),
    )(x3d, w, scale.reshape(1, cout), bias.reshape(1, cout))
    return out.reshape(n, cout)


# ------------------------------- JAX glue ------------------------------------
def extract_patches(x, k, s, p):
    """im2col for the dense stem conv: (N,H,W,C) -> (N*Ho*Wo, k*k*C)."""
    n, h, w, c = x.shape
    xp = jnp.pad(x, ((0, 0), (p, p), (p, p), (0, 0)))
    ho = (h + 2 * p - k) // s + 1
    wo = (w + 2 * p - k) // s + 1
    cols = [xp[:, kh:kh + s * (ho - 1) + 1:s, kw:kw + s * (wo - 1) + 1:s, :]
            for kh in range(k) for kw in range(k)]
    patches = jnp.concatenate(cols, axis=-1)
    return patches.reshape(n * ho * wo, k * k * c), ho, wo


# --------------------------- parameter construction --------------------------
# TODO(synk): if real torchvision weights are ever loaded, the im2col / (k*k,C)
# depthwise weight orderings must be permuted from PyTorch's (Cout,Cin,kh,kw).
def _conv_w(key, fan_in, cin, cout, cin_p=None, cout_p=None):
    cin_p = cin if cin_p is None else cin_p
    cout_p = cout if cout_p is None else cout_p
    w = jax.random.normal(key, (cin, cout), jnp.float32) * jnp.sqrt(2.0 / fan_in)
    wp = jnp.zeros((cin_p, cout_p), jnp.float32).at[:cin, :cout].set(w)
    return wp.astype(jnp.bfloat16)


def _bn_fold(key, c, c_p=None):
    c_p = c if c_p is None else c_p
    kg, kb = jax.random.split(key)
    gamma = 1.0 + 0.1 * jax.random.normal(kg, (c,), jnp.float32)
    beta = 0.1 * jax.random.normal(kb, (c,), jnp.float32)
    scale = gamma / jnp.sqrt(1.0 + _BN_EPS)   # running_mean=0, running_var=1
    bias = beta
    return (jnp.zeros((c_p,), jnp.float32).at[:c].set(scale),
            jnp.zeros((c_p,), jnp.float32).at[:c].set(bias))


def build_params(key):
    keys = iter(jax.random.split(key, 512))
    nk = lambda: next(keys)
    params = {"stem": {"w": _conv_w(nk(), 27, 27, 32, 27, _pad_c(32))}}
    params["stem"]["scale"], params["stem"]["bias"] = _bn_fold(nk(), 32, _pad_c(32))

    blocks = []
    for expand, k, s, cin, cout, nlayers in _CFG:
        for li in range(nlayers):
            bin_ = cin if li == 0 else cout
            bs = s if li == 0 else 1
            cexp = bin_ * expand
            cse = max(1, bin_ // 4)
            bin_p, cexp_p, cout_p = _pad_c(bin_), _pad_c(cexp), _pad_c(cout)
            b = {"k": k, "s": bs,
                 "has_expand": expand != 1,
                 "has_res": bs == 1 and bin_ == cout}
            if expand != 1:
                b["expand_w"] = _conv_w(nk(), bin_, bin_, cexp, bin_p, cexp_p)
                b["expand_scale"], b["expand_bias"] = _bn_fold(nk(), cexp, cexp_p)
            dw = jax.random.normal(nk(), (k * k, cexp), jnp.float32) * jnp.sqrt(
                2.0 / (k * k))
            b["dw_w"] = (jnp.zeros((k * k, cexp_p), jnp.float32)
                         .at[:, :cexp].set(dw).astype(jnp.bfloat16))
            b["dw_scale"], b["dw_bias"] = _bn_fold(nk(), cexp, cexp_p)
            b["se1_w"] = _conv_w(nk(), cexp, cexp, cse, cexp_p, cse)
            b["se1_b"] = jnp.zeros((cse,), jnp.float32)
            b["se2_w"] = _conv_w(nk(), cse, cse, cexp, cse, cexp_p)
            b["se2_b"] = jnp.zeros((cexp_p,), jnp.float32)
            b["proj_w"] = _conv_w(nk(), cexp, cexp, cout, cexp_p, cout_p)
            b["proj_scale"], b["proj_bias"] = _bn_fold(nk(), cout, cout_p)
            blocks.append(b)
    params["blocks"] = blocks

    params["head"] = {"w": _conv_w(nk(), 320, 320, 1280)}
    params["head"]["scale"], params["head"]["bias"] = _bn_fold(nk(), 1280)
    # classifier Linear(1280, 1); output padded to 128 lanes, sliced outside
    params["fc"] = {"w": _conv_w(nk(), 1280, 1280, 1, 1280, 128),
                    "b": jnp.zeros((128,), jnp.float32),
                    "scale": jnp.ones((128,), jnp.float32)}
    return params


# --------------------------------- forward -----------------------------------
def efficientnet_forward(x_nchw, P):
    x = jnp.transpose(x_nchw, (0, 2, 3, 1)).astype(jnp.bfloat16)  # NCHW -> NHWC
    n = x.shape[0]

    # stem: 3x3 s2 conv (im2col) + folded BN + SiLU
    patches, h_sp, w_sp = extract_patches(x, 3, 2, 1)
    h = pw_conv(patches, P["stem"]["w"], P["stem"]["scale"], P["stem"]["bias"],
                act="silu")

    for b in P["blocks"]:
        inp = h
        cin_p = h.shape[1]
        if b["has_expand"]:
            h = pw_conv(h, b["expand_w"], b["expand_scale"], b["expand_bias"],
                        act="silu")
        cexp_p = h.shape[1]
        # depthwise conv + BN + SiLU fused with SE average pool
        y, pooled, ho, wo = dw_conv_se_pool(
            h.reshape(n, h_sp, w_sp, cexp_p),
            b["dw_w"], b["dw_scale"], b["dw_bias"], b["k"], b["s"])
        # SE excitation (both FCs in one kernel)
        gate = se_mlp(pooled, b["se1_w"], b["se1_b"], b["se2_w"], b["se2_b"])
        # SE gating + projection conv + BN (+ residual; StochasticDepth is
        # identity in eval mode) fused into one matmul kernel
        res = inp.reshape(n, ho * wo, cin_p) if b["has_res"] else None
        h3 = proj_conv_se(y.reshape(n, ho * wo, cexp_p), gate,
                          b["proj_w"], b["proj_scale"], b["proj_bias"],
                          residual=res)
        h = h3.reshape(n * ho * wo, h3.shape[-1])
        h_sp, w_sp = ho, wo

    # head 1x1 conv + BN + SiLU fused with the global average pool
    pooled = head_conv_pool(h.reshape(n, h_sp * w_sp, h.shape[1]),
                            P["head"]["w"], P["head"]["scale"], P["head"]["bias"])
    # classifier: Dropout (identity in eval) + Linear(1280, 1)
    logits = pw_conv(pooled.astype(jnp.bfloat16), P["fc"]["w"], P["fc"]["scale"],
                     P["fc"]["b"], act="none", out_dtype=jnp.float32)
    return logits[:, :1]  # drop lane padding -> (N, 1)


if __name__ == "__main__":
    key = jax.random.PRNGKey(0)
    kp, kx = jax.random.split(key)
    params = build_params(kp)
    x = jax.random.normal(kx, (2, 3, 32, 32), jnp.float32)
    out = efficientnet_forward(x, params)
    out = jax.block_until_ready(out)
    assert out.shape == (2, 1), out.shape
    assert bool(jnp.all(jnp.isfinite(out)))
    print("KERNEL_OK")
</pallas_src>

<mosaic_0001>
module attributes {stable_mosaic.version = 11 : i64} {
  func.func @_mm_kernel(%arg0: i32, %arg1: memref<512x27xbf16, #tpu.memory_space<vmem>>, %arg2: memref<27x128xbf16, #tpu.memory_space<vmem>>, %arg3: memref<1x128xf32, #tpu.memory_space<vmem>>, %arg4: memref<1x128xf32, #tpu.memory_space<vmem>>, %arg5: memref<512x128xbf16, #tpu.memory_space<vmem>>) attributes {dimension_semantics = [#tpu.dimension_semantics<parallel>], iteration_bounds = array<i64: 1>, scalar_prefetch = 0 : i64, scratch_operands = 0 : i64, tpu.core_type = #tpu.core_type<tc>, window_params = [{transform_indices = @transform_0, window_bounds = array<i64: 512, 27>}, {pipeline_mode = #tpu.pipeline_mode<synchronous>, transform_indices = @transform_1, window_bounds = array<i64: 27, 128>}, {pipeline_mode = #tpu.pipeline_mode<synchronous>, transform_indices = @transform_2, window_bounds = array<i64: 1, 128>}, {pipeline_mode = #tpu.pipeline_mode<synchronous>, transform_indices = @transform_3, window_bounds = array<i64: 1, 128>}, {transform_indices = @transform_4, window_bounds = array<i64: 512, 128>}]} {
    %c0 = arith.constant 0 : index
    %c0_0 = arith.constant 0 : index
    %0 = vector.load %arg1[%c0, %c0_0] : memref<512x27xbf16, #tpu.memory_space<vmem>>, vector<512x27xbf16>
    %c0_1 = arith.constant 0 : index
    %c0_2 = arith.constant 0 : index
    %1 = vector.load %arg2[%c0_1, %c0_2] : memref<27x128xbf16, #tpu.memory_space<vmem>>, vector<27x128xbf16>
    %cst = arith.constant dense<0.000000e+00> : vector<512x128xf32>
    %2 = tpu.matmul %0, %1, %cst {dimension_numbers = #tpu.dot_dimension_numbers<[1], [0], [0], [1], [0, 0, 1, 1], [], []>} : vector<512x27xbf16>, vector<27x128xbf16>, vector<512x128xf32> -> vector<512x128xf32>
    %c0_3 = arith.constant 0 : index
    %c0_4 = arith.constant 0 : index
    %3 = vector.load %arg3[%c0_3, %c0_4] : memref<1x128xf32, #tpu.memory_space<vmem>>, vector<1x128xf32>
    %4 = vector.broadcast %3 : vector<1x128xf32> to vector<512x128xf32>
    %5 = arith.mulf %2, %4 : vector<512x128xf32>
    %c0_5 = arith.constant 0 : index
    %c0_6 = arith.constant 0 : index
    %6 = vector.load %arg4[%c0_5, %c0_6] : memref<1x128xf32, #tpu.memory_space<vmem>>, vector<1x128xf32>
    %7 = vector.broadcast %6 : vector<1x128xf32> to vector<512x128xf32>
    %8 = arith.addf %5, %7 : vector<512x128xf32>
    %cst_7 = arith.constant 0.000000e+00 : f32
    %9 = vector.broadcast %cst_7 : f32 to vector<512x128xf32>
    %10 = arith.subf %9, %8 : vector<512x128xf32>
    %11 = math.exp %10 : vector<512x128xf32>
    %cst_8 = arith.constant 1.000000e+00 : f32
    %12 = vector.broadcast %cst_8 : f32 to vector<512x128xf32>
    %13 = arith.addf %12, %11 : vector<512x128xf32>
    %14 = tpu.reciprocal %13 {approx = true} : vector<512x128xf32> -> vector<512x128xf32>
    %15 = arith.mulf %8, %14 : vector<512x128xf32>
    %16 = arith.truncf %15 : vector<512x128xf32> to vector<512x128xbf16>
    %c0_9 = arith.constant 0 : index
    %c0_10 = arith.constant 0 : index
    %17 = vector.load %arg5[%c0_9, %c0_10] : memref<512x128xbf16, #tpu.memory_space<vmem>>, vector<512x128xbf16>
    tpu.vector_store %arg5[%c0_9, %c0_10], %16 {strides = array<i32>} : memref<512x128xbf16, #tpu.memory_space<vmem>>, vector<512x128xbf16>,
    return
  }
  func.func @transform_0(%arg0: i32) -> (i32, i32) {
    %c0_i32 = arith.constant 0 : i32
    %c0_i32_0 = arith.constant 0 : i32
    return %arg0, %c0_i32 : i32, i32
  }
  func.func @transform_1(%arg0: i32) -> (i32, i32) {
    %c0_i32 = arith.constant 0 : i32
    %c0_i32_0 = arith.constant 0 : i32
    %c0_i32_1 = arith.constant 0 : i32
    return %c0_i32, %c0_i32_0 : i32, i32
  }
  func.func @transform_2(%arg0: i32) -> (i32, i32) {
    %c0_i32 = arith.constant 0 : i32
    %c0_i32_0 = arith.constant 0 : i32
    %c0_i32_1 = arith.constant 0 : i32
    return %c0_i32, %c0_i32_0 : i32, i32
  }
  func.func @transform_3(%arg0: i32) -> (i32, i32) {
    %c0_i32 = arith.constant 0 : i32
    %c0_i32_0 = arith.constant 0 : i32
    %c0_i32_1 = arith.constant 0 : i32
    return %c0_i32, %c0_i32_0 : i32, i32
  }
  func.func @transform_4(%arg0: i32) -> (i32, i32) {
    %c0_i32 = arith.constant 0 : i32
    %c0_i32_0 = arith.constant 0 : i32
    return %arg0, %c0_i32 : i32, i32
  }
}

</mosaic_0001>

<bundles_post_ra>
// kernel: tpu_custom_call.1
= control target key start
LH: loop header
LB: loop body
LE: loop exit
PB: predicated region body
PF: predicated region fallthrough
CT: control target
= control target key end

     0   :  { %vm355_vm0 = vcmask 1044480   ;;  %vm356_vm1 = vcmask 1045504   ;;  %v2324_v1 = vmov 65535   ;;  %vm258_vm2 = vcmask 220160   ;;  %s2948_s0 = inlined_call_operand.vmem [shape: bf16[512,27], index: 0, kind: input, shape index: {}]   ;;  %s2949_s1 = inlined_call_operand.vmem [shape: bf16[27,128], index: 1, kind: input, shape index: {}]   ;;  %s2950_s2 = inlined_call_operand.vmem [shape: f32[1,128], index: 2, kind: input, shape index: {}]   ;;  %s2951_s3 = inlined_call_operand.vmem [shape: f32[1,128], index: 3, kind: input, shape index: {}]   ;;  %s2952_s4 = inlined_call_operand.hbm [shape: bf16[512,128], index: 4, kind: output, shape index: {}]  }
   0x1   :  { %v2010_v0 = vld [vmem:[%s2949_s1 + $0x8] sm:$0x3f]   ;;  %v357_v2 = vsel %vm355_vm0, 4294967295, %v2324_v1  ;;  %v2012_v3 = vld [vmem:[%s2948_s0] sm:$0xff]   ;;  %v2016_v10 = vld [vmem:[%s2948_s0 + $0x10] sm:$0xff]  }
   0x2   :  { %v358_v4 = vsel %vm356_vm1, %v357_v2, 0  ;;  %v2011_v6 = vld [vmem:[%s2949_s1] sm:$0xff]   ;;  %1938 = vmatprep.mubr.msk.bf16.mxu0 %vm258_vm2, %v2012_v3  ;;  %v2014_v8 = vld [vmem:[%s2948_s0 + $0x8] sm:$0xff]   ;;  %v2017_v11 = vld [vmem:[%s2948_s0 + $0x90] sm:$0xff]  }
   0x3   :  { %v360_v5 = vand.u32 %v2010_v0, %v358_v4  ;;  %v2013_v7 = vld [vmem:[%s2948_s0 + $0x80] sm:$0xff]   ;;  %v2015_v9 = vld [vmem:[%s2948_s0 + $0x88] sm:$0xff]   ;;  %v2018_v12 = vld [vmem:[%s2948_s0 + $0x18] sm:$0xff]  }
   0x4   :  { %1970 = vmatprep.mubr.msk.bf16.mxu1 %vm258_vm2, %v2013_v7  ;;  %v2019_v13 = vld [vmem:[%s2948_s0 + $0x98] sm:$0xff]   ;;  %v2020_v14 = vld [vmem:[%s2948_s0 + $0x20] sm:$0xff]   ;;  %v2022_v16 = vld [vmem:[%s2948_s0 + $0x28] sm:$0xff]  }
   0x5   :  { %1934 = vmatprep.subr.bf16.mxu0 %v360_v5  ;;  %2002 = vmatprep.subr.bf16.mxu1 %v360_v5  ;;  %v2021_v15 = vld [vmem:[%s2948_s0 + $0xa0] sm:$0xff]   ;;  %v2023_v17 = vld [vmem:[%s2948_s0 + $0xa8] sm:$0xff]   ;;  %v2024_v18 = vld [vmem:[%s2948_s0 + $0x30] sm:$0xff]  }
   0x6   :  { %1935 = vmatpush3.bf16.msra.mxu0 %v360_v5  ;;  %2004 = vmatpush3.bf16.msra.mxu1 %v360_v5  ;;  %v2025_v19 = vld [vmem:[%s2948_s0 + $0xb0] sm:$0xff]   ;;  %v2026_v20 = vld [vmem:[%s2948_s0 + $0x38] sm:$0xff]  }
   0x7   :  { %1936 = vmatprep.subr.bf16.mxu0 %v2011_v6  ;;  %2003 = vmatprep.subr.bf16.mxu1 %v2011_v6  ;;  %v2027_v21 = vld [vmem:[%s2948_s0 + $0xb8] sm:$0xff]  }
   0xa   :  { %1937 = vmatpush3.bf16.msra.mxu0 %v2011_v6  ;;  %2005 = vmatpush3.bf16.msra.mxu1 %v2011_v6 }
   0xd   :  { %1939 = vmatmul.mubr.msk.bf16.vlgmr.msra.gmra.mxu0 %vm258_vm2, %v2014_v8  ;;  %1971 = vmatmul.mubr.msk.bf16.vlgmr.msra.gmra.mxu1 %vm258_vm2, %v2015_v9 }
   0xe   :  { %1942 = vmatprep.mubr.msk.bf16.mxu0 %vm258_vm2, %v2016_v10  ;;  %1974 = vmatprep.mubr.msk.bf16.mxu1 %vm258_vm2, %v2017_v11 }
  0x15   :  { %1943 = vmatmul.mubr.msk.bf16.gmra.mxu0 %vm258_vm2, %v2018_v12  ;;  %1975 = vmatmul.mubr.msk.bf16.gmra.mxu1 %vm258_vm2, %v2019_v13 }
  0x16   :  { %1946 = vmatprep.mubr.msk.bf16.mxu0 %vm258_vm2, %v2020_v14  ;;  %1978 = vmatprep.mubr.msk.bf16.mxu1 %vm258_vm2, %v2021_v15 }
  0x1d   :  { %1947 = vmatmul.mubr.msk.bf16.gmra.mxu0 %vm258_vm2, %v2022_v16  ;;  %1979 = vmatmul.mubr.msk.bf16.gmra.mxu1 %vm258_vm2, %v2023_v17 }
  0x1e   :  { %1950 = vmatprep.mubr.msk.bf16.mxu0 %vm258_vm2, %v2024_v18  ;;  %1982 = vmatprep.mubr.msk.bf16.mxu1 %vm258_vm2, %v2025_v19 }
  0x1f   :  { %9 = vsyncpa [#allocation3], 0  ;;  %v2028_v22 = vld [vmem:[%s2948_s0 + $0x40] sm:$0xff]   ;;  %v2030_v24 = vld [vmem:[%s2948_s0 + $0x48] sm:$0xff]  }
  0x20   :  { %v2029_v23 = vld [vmem:[%s2948_s0 + $0xc0] sm:$0xff]   ;;  %v2031_v25 = vld [vmem:[%s2948_s0 + $0xc8] sm:$0xff]   ;;  %v2032_v26 = vld [vmem:[%s2948_s0 + $0x50] sm:$0xff]  }
  0x21   :  { %v2033_v27 = vld [vmem:[%s2948_s0 + $0xd0] sm:$0xff]   ;;  %v2034_v28 = vld [vmem:[%s2948_s0 + $0x58] sm:$0xff]   ;;  %v2036_v30 = vld [vmem:[%s2948_s0 + $0x60] sm:$0xff]  }
  0x22   :  { %v2035_v29 = vld [vmem:[%s2948_s0 + $0xd8] sm:$0xff]   ;;  %v2037_v31 = vld [vmem:[%s2948_s0 + $0xe0] sm:$0xff]   ;;  %v2038_v32 = vld [vmem:[%s2948_s0 + $0x68] sm:$0xff]  }
  0x23   :  { %v2039_v33 = vld [vmem:[%s2948_s0 + $0xe8] sm:$0xff]   ;;  %v2040_v34 = vld [vmem:[%s2948_s0 + $0x70] sm:$0xff]   ;;  %v2042_v36 = vld [vmem:[%s2948_s0 + $0x78] sm:$0xff]  }
  0x24   :  { %v2041_v35 = vld [vmem:[%s2948_s0 + $0xf0] sm:$0xff]   ;;  %v2043_v37 = vld [vmem:[%s2948_s0 + $0xf8] sm:$0xff]   ;;  %v2490_v38 = vld [vmem:[%s2950_s2] ss:$0 sm:$0xff] }
  0x25   :  { %1951 = vmatmul.mubr.msk.bf16.gmra.mxu0 %vm258_vm2, %v2026_v20  ;;  %1983 = vmatmul.mubr.msk.bf16.gmra.mxu1 %vm258_vm2, %v2027_v21  ;;  %v2495_v40 = vld [vmem:[%s2951_s3] ss:$0 sm:$0xff] }
  0x26   :  { %1954 = vmatprep.mubr.msk.bf16.mxu0 %vm258_vm2, %v2028_v22  ;;  %1986 = vmatprep.mubr.msk.bf16.mxu1 %vm258_vm2, %v2029_v23 }
  0x2d   :  { %1955 = vmatmul.mubr.msk.bf16.gmra.mxu0 %vm258_vm2, %v2030_v24  ;;  %1987 = vmatmul.mubr.msk.bf16.gmra.mxu1 %vm258_vm2, %v2031_v25 }
  0x2e   :  { %1958 = vmatprep.mubr.msk.bf16.mxu0 %vm258_vm2, %v2032_v26  ;;  %1990 = vmatprep.mubr.msk.bf16.mxu1 %vm258_vm2, %v2033_v27 }
  0x35   :  { %1959 = vmatmul.mubr.msk.bf16.gmra.mxu0 %vm258_vm2, %v2034_v28  ;;  %1991 = vmatmul.mubr.msk.bf16.gmra.mxu1 %vm258_vm2, %v2035_v29 }
  0x36   :  { %1962 = vmatprep.mubr.msk.bf16.mxu0 %vm258_vm2, %v2036_v30  ;;  %1994 = vmatprep.mubr.msk.bf16.mxu1 %vm258_vm2, %v2037_v31 }
  0x3d   :  { %1963 = vmatmul.mubr.msk.bf16.gmra.mxu0 %vm258_vm2, %v2038_v32  ;;  %1995 = vmatmul.mubr.msk.bf16.gmra.mxu1 %vm258_vm2, %v2039_v33 }
  0x3e   :  { %1966 = vmatprep.mubr.msk.bf16.mxu0 %vm258_vm2, %v2040_v34  ;;  %1998 = vmatprep.mubr.msk.bf16.mxu1 %vm258_vm2, %v2041_v35 }
  0x45   :  { %1967 = vmatmul.mubr.msk.bf16.gmra.mxu0 %vm258_vm2, %v2042_v36  ;;  %1999 = vmatmul.mubr.msk.bf16.gmra.mxu1 %vm258_vm2, %v2043_v37 }
  0xcd   :  { %v1940_v39 = vpop.f32.mrf.mxu0  ;;  %v1972_v41 = vpop.f32.mrf.mxu1 }
  0xce   :  { %v660_v42 = vmul.f32 %v1940_v39, %v2490_v38  ;;  %v692_v43 = vmul.f32 %v1972_v41, %v2490_v38 }
  0xcf   :  { %v396_v44 = vpop.f32.mrf.mxu0  ;;  %v524_v45 = vpop.f32.mrf.mxu1 }
  0xd0   :  { %v2500_v46 = vadd.f32 %v2495_v40, %v660_v42  ;;  %v2503_v47 = vadd.f32 %v2495_v40, %v692_v43  ;;  %v658_v48 = vmul.f32 %v2490_v38, %v396_v44  ;;  %v690_v49 = vmul.f32 %v2490_v38, %v524_v45 }
  0xd1   :  { %v1941_v50 = vpop.f32.mrf.mxu0  ;;  %v1973_v51 = vpop.f32.mrf.mxu1 }
  0xd2   :  { %v795_v52 = vsub.f32 0.0, %v2500_v46  ;;  %v827_v53 = vsub.f32 0.0, %v2503_v47  ;;  %v2510_v54 = vadd.f32 %v2495_v40, %v658_v48  ;;  %v2513_v55 = vadd.f32 %v2495_v40, %v690_v49 }
  0xd3   :  { %v661_v56 = vmul.f32 %v1941_v50, %v2490_v38  ;;  %v693_v57 = vmul.f32 %v1973_v51, %v2490_v38  ;;  %v399_v58 = vpop.f32.mrf.mxu0  ;;  %v527_v59 = vpop.f32.mrf.mxu1 }
  0xd4   :  { %v861_v60 = vmul.f32 1.442695, %v795_v52  ;;  %v925_v61 = vmul.f32 1.442695, %v827_v53  ;;  %v793_v62 = vsub.f32 0.0, %v2510_v54  ;;  %v825_v63 = vsub.f32 0.0, %v2513_v55 }
  0xd5   :  { %v2520_v0 = vadd.f32 %v2495_v40, %v661_v56  ;;  %v2523_v1 = vadd.f32 %v2495_v40, %v693_v57  ;;  %v659_v2 = vmul.f32 %v2490_v38, %v399_v58  ;;  %v691_v3 = vmul.f32 %v2490_v38, %v527_v59  ;;  %v1944_v4 = vpop.f32.mrf.mxu0  ;;  %v1976_v5 = vpop.f32.mrf.mxu1 }
  0xd6   :  { %2044 = vpow2.f32 %v861_v60  ;;  %v857_v6 = vmul.f32 1.442695, %v793_v62  ;;  %v921_v7 = vmul.f32 1.442695, %v825_v63  ;;  %v664_v8 = vmul.f32 %v1944_v4, %v2490_v38 }
  0xd7   :  { %2046 = vpow2.f32 %v925_v61  ;;  %v796_v9 = vsub.f32 0.0, %v2520_v0  ;;  %v828_v10 = vsub.f32 0.0, %v2523_v1  ;;  %v2531_v11 = vadd.f32 %v2495_v40, %v659_v2  ;;  %v412_v12 = vpop.f32.mrf.mxu0  ;;  %v540_v13 = vpop.f32.mrf.mxu1 }
  0xd8   :  { %2048 = vpow2.f32 %v857_v6  ;;  %v2534_v14 = vadd.f32 %v2495_v40, %v691_v3  ;;  %v2537_v15 = vadd.f32 %v2495_v40, %v664_v8  ;;  %v696_v16 = vmul.f32 %v1976_v5, %v2490_v38 }
  0xd9   :  { %2050 = vpow2.f32 %v921_v7  ;;  %v863_v17 = vmul.f32 1.442695, %v796_v9  ;;  %v927_v18 = vmul.f32 1.442695, %v828_v10  ;;  %v794_v19 = vsub.f32 0.0, %v2531_v11  ;;  %v1945_v20 = vpop.f32.mrf.mxu0  ;;  %v1977_v21 = vpop.f32.mrf.mxu1 }
  0xda   :  { %v826_v22 = vsub.f32 0.0, %v2534_v14  ;;  %v799_v23 = vsub.f32 0.0, %v2537_v15  ;;  %v2544_v24 = vadd.f32 %v2495_v40, %v696_v16  ;;  %v662_v25 = vmul.f32 %v2490_v38, %v412_v12 }
  0xdb   :  { %2052 = vpow2.f32 %v863_v17  ;;  %v859_v26 = vmul.f32 1.442695, %v794_v19  ;;  %v694_v27 = vmul.f32 %v2490_v38, %v540_v13  ;;  %v665_v28 = vmul.f32 %v1945_v20, %v2490_v38  ;;  %v415_v29 = vpop.f32.mrf.mxu0  ;;  %v543_v30 = vpop.f32.mrf.mxu1 }
  0xdc   :  { %2054 = vpow2.f32 %v927_v18  ;;  %v923_v31 = vmul.f32 1.442695, %v826_v22  ;;  %v869_v32 = vmul.f32 1.442695, %v799_v23  ;;  %v831_v33 = vsub.f32 0.0, %v2544_v24 }
  0xdd   :  { %2056 = vpow2.f32 %v859_v26  ;;  %v2551_v34 = vadd.f32 %v2495_v40, %v662_v25  ;;  %v2554_v35 = vadd.f32 %v2495_v40, %v694_v27  ;;  %v2557_v36 = vadd.f32 %v2495_v40, %v665_v28  ;;  %v1948_v37 = vpop.f32.mrf.mxu0  ;;  %v1980_v39 = vpop.f32.mrf.mxu1 }
  0xde   :  { %2058 = vpow2.f32 %v923_v31  ;;  %v933_v41 = vmul.f32 1.442695, %v831_v33  ;;  %v697_v42 = vmul.f32 %v1977_v21, %v2490_v38  ;;  %v663_v43 = vmul.f32 %v2490_v38, %v415_v29 }
  0xdf   :  { %2060 = vpow2.f32 %v869_v32  ;;  %v797_v44 = vsub.f32 0.0, %v2551_v34  ;;  %v829_v45 = vsub.f32 0.0, %v2554_v35  ;;  %v800_v48 = vsub.f32 0.0, %v2557_v36  ;;  %v428_v52 = vpop.f32.mrf.mxu0  ;;  %v556_v53 = vpop.f32.mrf.mxu1 }
  0xe0   :  { %2062 = vpow2.f32 %v933_v41  ;;  %v2565_v49 = vadd.f32 %v2495_v40, %v697_v42  ;;  %v2568_v50 = vadd.f32 %v2495_v40, %v663_v43  ;;  %v695_v51 = vmul.f32 %v2490_v38, %v543_v30 }
  0xe1   :  { %v865_v56 = vmul.f32 1.442695, %v797_v44  ;;  %v929_v57 = vmul.f32 1.442695, %v829_v45  ;;  %v871_v58 = vmul.f32 1.442695, %v800_v48  ;;  %v668_v59 = vmul.f32 %v1948_v37, %v2490_v38  ;;  %v1949_v10 = vpop.f32.mrf.mxu0  ;;  %v1981_v18 = vpop.f32.mrf.mxu1 }
  0xe2   :  { %v832_v60 = vsub.f32 0.0, %v2565_v49  ;;  %v798_v61 = vsub.f32 0.0, %v2568_v50  ;;  %v2575_v62 = vadd.f32 %v2495_v40, %v695_v51  ;;  %v700_v63 = vmul.f32 %v1980_v39, %v2490_v38 }
  0xe3   :  { %v2045_v2 = vpop.eup %2044  ;;  %2064 = vpow2.f32 %v865_v56  ;;  %v2579_v3 = vadd.f32 %v2495_v40, %v668_v59  ;;  %v666_v4 = vmul.f32 %v2490_v38, %v428_v52  ;;  %v698_v5 = vmul.f32 %v2490_v38, %v556_v53  ;;  %v431_v31 = vpop.f32.mrf.mxu0 }
  0xe4   :  { %v2047_v6 = vpop.eup %2046  ;;  %v987_v7 = vadd.f32 1.0, %v2045_v2  ;;  %2066 = vpow2.f32 %v929_v57  ;;  %v935_v8 = vmul.f32 1.442695, %v832_v60  ;;  %v2583_v9 = vmul.f32 1.442695, %v798_v61  ;;  %v559_v41 = vpop.f32.mrf.mxu1 }
  0xe5   :  { %v2049_v12 = vpop.eup %2048  ;;  %v1019_v13 = vadd.f32 1.0, %v2047_v6  ;;  %2068 = vpow2.f32 %v871_v58  ;;  %v830_v16 = vsub.f32 0.0, %v2575_v62  ;;  %v803_v17 = vsub.f32 0.0, %v2579_v3  ;;  %v1952_v60 = vpop.f32.mrf.mxu0 }
  0xe6   :  { %v2051_v19 = vpop.eup %2050  ;;  %2070 = vrcp.f32 %v987_v7  ;;  %v985_v20 = vadd.f32 1.0, %v2049_v12  ;;  %v2588_v21 = vadd.f32 %v2495_v40, %v700_v63  ;;  %v2591_v22 = vadd.f32 %v2495_v40, %v666_v4 }
  0xe7   :  { %2072 = vrcp.f32 %v1019_v13  ;;  %v1017_v23 = vadd.f32 1.0, %v2051_v19  ;;  %v931_v25 = vmul.f32 1.442695, %v830_v16  ;;  %v2593_v26 = vmul.f32 1.442695, %v803_v17 }
  0xe8   :  { %v2053_v27 = vpop.eup %2052  ;;  %2074 = vrcp.f32 %v985_v20  ;;  %v835_v28 = vsub.f32 0.0, %v2588_v21  ;;  %v801_v29 = vsub.f32 0.0, %v2591_v22  ;;  %v2598_v30 = vadd.f32 %v2495_v40, %v698_v5  ;;  %v1984_v5 = vpop.f32.mrf.mxu1 }
  0xe9   :  { %v2055_v32 = vpop.eup %2054  ;;  %2076 = vrcp.f32 %v1017_v23  ;;  %v988_v33 = vadd.f32 1.0, %v2053_v27  ;;  %v669_v37 = vmul.f32 %v1949_v10, %v2490_v38  ;;  %v701_v39 = vmul.f32 %v1981_v18, %v2490_v38  ;;  %v444_v20 = vpop.f32.mrf.mxu0 }
  0xea   :  { %v2057_v42 = vpop.eup %2056  ;;  %v1020_v43 = vadd.f32 1.0, %v2055_v32  ;;  %2078 = vpow2.f32 %v935_v8  ;;  %v2602_v44 = vmul.f32 1.442695, %v835_v28  ;;  %v2604_v45 = vmul.f32 1.442695, %v801_v29 }
  0xeb   :  { %v2059_v48 = vpop.eup %2058  ;;  %2080 = vrcp.f32 %v988_v33  ;;  %v986_v51 = vadd.f32 1.0, %v2057_v42  ;;  %v833_v52 = vsub.f32 0.0, %v2598_v30  ;;  %v2608_v53 = vadd.f32 %v2495_v40, %v669_v37 }
  0xec   :  { %v2061_v56 = vpop.eup %2060  ;;  %2082 = vrcp.f32 %v1020_v43  ;;  %v1018_v57 = vadd.f32 1.0, %v2059_v48  ;;  %v2611_v58 = vadd.f32 %v2495_v40, %v701_v39  ;;  %v667_v59 = vmul.f32 %v2490_v38, %v431_v31  ;;  %v572_v31 = vpop.f32.mrf.mxu1 }
  0xed   :  { %v2063_v61 = vpop.eup %2062  ;;  %2084 = vrcp.f32 %v986_v51  ;;  %v991_v63 = vadd.f32 1.0, %v2061_v56  ;;  %v937_v2 = vmul.f32 1.442695, %v833_v52  ;;  %v804_v4 = vsub.f32 0.0, %v2608_v53 }
  0xee   :  { %2086 = vrcp.f32 %v1018_v57  ;;  %v1023_v6 = vadd.f32 1.0, %v2063_v61  ;;  %v836_v7 = vsub.f32 0.0, %v2611_v58  ;;  %v2617_v8 = vadd.f32 %v2495_v40, %v667_v59 }
  0xef   :  { %2088 = vrcp.f32 %v991_v63  ;;  %v2619_v10 = vmul.f32 1.442695, %v804_v4  ;;  %v699_v12 = vmul.f32 %v2490_v38, %v559_v41  ;;  %v672_v13 = vmul.f32 %v1952_v60, %v2490_v38  ;;  %v1985_v63 = vpop.f32.mrf.mxu1 }
  0xf0   :  { %v2065_v16 = vpop.eup %2064  ;;  %2090 = vrcp.f32 %v1023_v6  ;;  %v2623_v17 = vmul.f32 1.442695, %v836_v7  ;;  %v802_v18 = vsub.f32 0.0, %v2617_v8  ;;  %v704_v19 = vmul.f32 %v1984_v5, %v2490_v38 }
  0xf1   :  { %v2067_v23 = vpop.eup %2066  ;;  %v989_v27 = vadd.f32 1.0, %v2065_v16  ;;  %2092 = vpow2.f32 %v2583_v9  ;;  %v2629_v28 = vadd.f32 %v2495_v40, %v699_v12  ;;  %v2632_v29 = vadd.f32 %v2495_v40, %v672_v13 }
  0xf2   :  { %v2069_v32 = vpop.eup %2068  ;;  %v1021_v33 = vadd.f32 1.0, %v2067_v23  ;;  %2094 = vpow2.f32 %v931_v25  ;;  %v875_v37 = vmul.f32 1.442695, %v802_v18  ;;  %v2635_v39 = vadd.f32 %v2495_v40, %v704_v19  ;;  %v1953_v25 = vpop.f32.mrf.mxu0 }
  0xf3   :  { %v2071_v41 = vpop.eup %2070  ;;  %2096 = vrcp.f32 %v989_v27  ;;  %v992_v42 = vadd.f32 1.0, %v2069_v32  ;;  %v834_v43 = vsub.f32 0.0, %v2629_v28  ;;  %v807_v9 = vsub.f32 0.0, %v2632_v29 }
  0xf4   :  { %v2073_v48 = vpop.eup %2072  ;;  %v1115_v51 = vmul.f32 %v2071_v41, %v2500_v46  ;;  %2098 = vrcp.f32 %v1021_v33  ;;  %v839_v52 = vsub.f32 0.0, %v2635_v39  ;;  %v670_v56 = vmul.f32 %v2490_v38, %v444_v20  ;;  %v447_v23 = vpop.f32.mrf.mxu0 }
  0xf5   :  { %v2075_v57 = vpop.eup %2074  ;;  %v1147_v59 = vmul.f32 %v2073_v48, %v2503_v47  ;;  %2100 = vrcp.f32 %v992_v42  ;;  %v939_v60 = vmul.f32 1.442695, %v834_v43  ;;  %v885_v61 = vmul.f32 1.442695, %v807_v9  ;;  %v575_v48 = vpop.f32.mrf.mxu1 }
  0xf6   :  { %v2077_v4 = vpop.eup %2076  ;;  %v1113_v5 = vmul.f32 %v2075_v57, %v2510_v54  ;;  %2102 = vpow2.f32 %v2593_v26  ;;  %v949_v6 = vmul.f32 1.442695, %v839_v52  ;;  %v2646_v46 = vadd.f32 %v2495_v40, %v670_v56 }
  0xf7   :  { %v2079_v7 = vpop.eup %2078  ;;  %v1145_v12 = vmul.f32 %v2077_v4, %v2513_v55  ;;  %2104 = vpow2.f32 %v2602_v44  ;;  %v702_v47 = vmul.f32 %v2490_v38, %v572_v31  ;;  %v673_v13 = vmul.f32 %v1953_v25, %v2490_v38  ;;  %v1956_v25 = vpop.f32.mrf.mxu0 }
  0xf8   :  { %v2081_v16 = vpop.eup %2080  ;;  %v1024_v18 = vadd.f32 1.0, %v2079_v7  ;;  %2106 = vpow2.f32 %v2604_v45  ;;  %v805_v54 = vsub.f32 0.0, %v2646_v46  ;;  %v705_v26 = vmul.f32 %v1985_v63, %v2490_v38 }
  0xf9   :  { %v2083_v19 = vpop.eup %2082  ;;  %v1116_v20 = vmul.f32 %v2081_v16, %v2520_v0  ;;  %2108 = vpow2.f32 %v937_v2  ;;  %v2657_v55 = vadd.f32 %v2495_v40, %v702_v47  ;;  %v2660_v44 = vadd.f32 %v2495_v40, %v673_v13  ;;  %v460_v16 = vpop.f32.mrf.mxu0 }
  0xfa   :  { %v2085_v27 = vpop.eup %2084  ;;  %v1148_v31 = vmul.f32 %v2083_v19, %v2523_v1  ;;  %2110 = vrcp.f32 %v1024_v18  ;;  %v881_v45 = vmul.f32 1.442695, %v805_v54  ;;  %v2664_v32 = vadd.f32 %v2495_v40, %v705_v26 }
  0xfb   :  { %v2087_v33 = vpop.eup %2086  ;;  %v1717_v41 = vpack.c.bf16 %v1116_v20, %v1115_v51  ;;  %v1114_v0 = vmul.f32 %v2085_v27, %v2531_v11  ;;  %2112 = vpow2.f32 %v2619_v10  ;;  %v837_v2 = vsub.f32 0.0, %v2657_v55 }
  0xfc   :  { %v2089_v42 = vpop.eup %2088  ;;  %v1797_v43 = vpack.c.bf16 %v1148_v31, %v1147_v59  ;;  %v1146_v9 = vmul.f32 %v2087_v33, %v2534_v14  ;;  %2114 = vpow2.f32 %v2623_v17  ;;  %v808_v1 = vsub.f32 0.0, %v2660_v44 }
  0xfd   :  { %v2091_v52 = vpop.eup %2090  ;;  %1869 = vst [vmem:[#allocation2 + $0x8] sm:$0xff] %v1717_v41   ;;  %v1712_v56 = vpack.c.bf16 %v1114_v0, %v1113_v5  ;;  %v1119_v51 = vmul.f32 %v2089_v42, %v2537_v15  ;;  %2116 = vpow2.f32 %v875_v37  ;;  %v945_v11 = vmul.f32 1.442695, %v837_v2 }
  0xfe   :  { %v2093_v10 = vpop.eup %2092  ;;  %1885 = vst [vmem:[#allocation2 + $0x88] sm:$0xff] %v1797_v43   ;;  %v1792_v57 = vpack.c.bf16 %v1146_v9, %v1145_v12  ;;  %v2674_v59 = vmul.f32 %v2091_v52, %v2544_v24  ;;  %2118 = vpow2.f32 %v939_v60  ;;  %v887_v14 = vmul.f32 1.442695, %v808_v1  ;;  %v1988_v24 = vpop.f32.mrf.mxu1 }
  0xff   :  { %v2095_v17 = vpop.eup %2094  ;;  %1713 = vst [vmem:[#allocation2] sm:$0xff] %v1712_v56   ;;  %v990_v63 = vadd.f32 1.0, %v2093_v10  ;;  %2120 = vpow2.f32 %v885_v61  ;;  %v840_v4 = vsub.f32 0.0, %v2664_v32  ;;  %v671_v5 = vmul.f32 %v2490_v38, %v447_v23 }
 0x100   :  { %v2097_v15 = vpop.eup %2096  ;;  %1884 = vst [vmem:[#allocation2 + $0x80] sm:$0xff] %v1792_v57   ;;  %v1022_v37 = vadd.f32 1.0, %v2095_v17  ;;  %2122 = vpow2.f32 %v949_v6  ;;  %v703_v7 = vmul.f32 %v2490_v38, %v575_v48  ;;  %v676_v12 = vmul.f32 %v1956_v25, %v2490_v38  ;;  %v588_v43 = vpop.f32.mrf.mxu1 }
 0x101   :  { %v2099_v47 = vpop.eup %2098  ;;  %v2681_v60 = vmul.f32 %v2097_v15, %v2551_v34  ;;  %2124 = vrcp.f32 %v990_v63  ;;  %v951_v13 = vmul.f32 1.442695, %v840_v4  ;;  %v2684_v61 = vadd.f32 %v2495_v40, %v671_v5 }
 0x102   :  { %v2101_v18 = vpop.eup %2100  ;;  %v2687_v54 = vmul.f32 %v2099_v47, %v2554_v35  ;;  %2126 = vrcp.f32 %v1022_v37  ;;  %v2690_v6 = vadd.f32 %v2495_v40, %v703_v7  ;;  %v2693_v26 = vadd.f32 %v2495_v40, %v676_v12  ;;  %v1989_v15 = vpop.f32.mrf.mxu1 }
 0x103   :  { %v2103_v19 = vpop.eup %2102  ;;  %v1120_v34 = vmul.f32 %v2101_v18, %v2557_v36  ;;  %2128 = vpow2.f32 %v881_v45  ;;  %v806_v20 = vsub.f32 0.0, %v2684_v61  ;;  %v708_v23 = vmul.f32 %v1988_v24, %v2490_v38  ;;  %v1957_v36 = vpop.f32.mrf.mxu0 }
 0x104   :  { %v2105_v27 = vpop.eup %2104  ;;  %v995_v31 = vadd.f32 1.0, %v2103_v19  ;;  %2130 = vpow2.f32 %v945_v11  ;;  %v838_v35 = vsub.f32 0.0, %v2690_v6  ;;  %v811_v33 = vsub.f32 0.0, %v2693_v26 }
 0x105   :  { %v2107_v41 = vpop.eup %2106  ;;  %v1727_v0 = vpack.c.bf16 %v1120_v34, %v1119_v51  ;;  %v1027_v2 = vadd.f32 1.0, %v2105_v27  ;;  %2132 = vpow2.f32 %v887_v14  ;;  %v2700_v42 = vmul.f32 1.442695, %v806_v20 }
 0x106   :  { %v2109_v45 = vpop.eup %2108  ;;  %2134 = vrcp.f32 %v995_v31  ;;  %v993_v9 = vadd.f32 1.0, %v2107_v41  ;;  %v2702_v1 = vmul.f32 1.442695, %v838_v35  ;;  %v2704_v48 = vmul.f32 1.442695, %v811_v33  ;;  %v591_v33 = vpop.f32.mrf.mxu1 }
 0x107   :  { %v2111_v52 = vpop.eup %2110  ;;  %1871 = vst [vmem:[#allocation2 + $0x18] sm:$0xff] %v1727_v0   ;;  %2136 = vrcp.f32 %v1027_v2  ;;  %v1025_v56 = vadd.f32 1.0, %v2109_v45  ;;  %v2707_v11 = vadd.f32 %v2495_v40, %v708_v23  ;;  %v674_v51 = vmul.f32 %v2490_v38, %v460_v16 }
 0x108   :  { %v2113_v25 = vpop.eup %2112  ;;  %v1152_v10 = vmul.f32 %v2111_v52, %v2565_v49  ;;  %2138 = vrcp.f32 %v993_v9  ;;  %v706_v57 = vmul.f32 %v2490_v38, %v588_v43  ;;  %v677_v14 = vmul.f32 %v1957_v36, %v2490_v38 }
 0x109   :  { %v2115_v17 = vpop.eup %2114  ;;  %2140 = vrcp.f32 %v1025_v56  ;;  %v996_v63 = vadd.f32 1.0, %v2113_v25  ;;  %v843_v4 = vsub.f32 0.0, %v2707_v11  ;;  %v2715_v5 = vadd.f32 %v2495_v40, %v674_v51 }
 0x10a   :  { %v2117_v37 = vpop.eup %2116  ;;  %v1807_v7 = vpack.c.bf16 %v1152_v10, %v2674_v59  ;;  %v1028_v12 = vadd.f32 1.0, %v2115_v17  ;;  %2142 = vpow2.f32 %v951_v13  ;;  %v2719_v49 = vadd.f32 %v2495_v40, %v706_v57  ;;  %v463_v13 = vpop.f32.mrf.mxu0 }
 0x10b   :  { %v2119_v24 = vpop.eup %2118  ;;  %2144 = vrcp.f32 %v996_v63  ;;  %v994_v47 = vadd.f32 1.0, %v2117_v37  ;;  %v2721_v16 = vmul.f32 1.442695, %v843_v4  ;;  %v809_v18 = vsub.f32 0.0, %v2715_v5 }
 0x10c   :  { %v2121_v19 = vpop.eup %2120  ;;  %1887 = vst [vmem:[#allocation2 + $0x98] sm:$0xff] %v1807_v7   ;;  %2146 = vrcp.f32 %v1028_v12  ;;  %v1026_v34 = vadd.f32 1.0, %v2119_v24  ;;  %v841_v20 = vsub.f32 0.0, %v2719_v49  ;;  %v2726_v59 = vadd.f32 %v2495_v40, %v677_v14  ;;  %v1960_v63 = vpop.f32.mrf.mxu0 }
 0x10d   :  { %v2123_v23 = vpop.eup %2122  ;;  %2148 = vrcp.f32 %v994_v47  ;;  %v999_v27 = vadd.f32 1.0, %v2121_v19  ;;  %v889_v31 = vmul.f32 1.442695, %v809_v18  ;;  %v709_v35 = vmul.f32 %v1989_v15, %v2490_v38  ;;  %v1992_v7 = vpop.f32.mrf.mxu1 }
 0x10e   :  { %v2125_v41 = vpop.eup %2124  ;;  %2150 = vrcp.f32 %v1026_v34  ;;  %v1031_v0 = vadd.f32 1.0, %v2123_v23  ;;  %v953_v2 = vmul.f32 1.442695, %v841_v20  ;;  %v812_v43 = vsub.f32 0.0, %v2726_v59  ;;  %v476_v23 = vpop.f32.mrf.mxu0 }
 0x10f   :  { %v2127_v36 = vpop.eup %2126  ;;  %v1118_v45 = vmul.f32 %v2125_v41, %v2568_v50  ;;  %2152 = vrcp.f32 %v999_v27  ;;  %v2732_v9 = vadd.f32 %v2495_v40, %v709_v35  ;;  %v675_v52 = vmul.f32 %v2490_v38, %v463_v13  ;;  %v604_v41 = vpop.f32.mrf.mxu1 }
 0x110   :  { %v2129_v56 = vpop.eup %2128  ;;  %v1150_v51 = vmul.f32 %v2127_v36, %v2575_v62  ;;  %2154 = vrcp.f32 %v1031_v0  ;;  %v895_v25 = vmul.f32 1.442695, %v812_v43  ;;  %v707_v10 = vmul.f32 %v2490_v38, %v591_v33 }
 0x111   :  { %v2131_v57 = vpop.eup %2130  ;;  %v1722_v14 = vpack.c.bf16 %v1118_v45, %v2681_v60  ;;  %v997_v17 = vadd.f32 1.0, %v2129_v56  ;;  %2156 = vpow2.f32 %v2700_v42  ;;  %v844_v50 = vsub.f32 0.0, %v2732_v9 }
 0x112   :  { %v2133_v4 = vpop.eup %2132  ;;  %v1802_v15 = vpack.c.bf16 %v1150_v51, %v2687_v54  ;;  %v1029_v37 = vadd.f32 1.0, %v2131_v57  ;;  %2158 = vpow2.f32 %v2702_v1  ;;  %v2743_v62 = vadd.f32 %v2495_v40, %v675_v52 }
 0x113   :  { %v2135_v12 = vpop.eup %2134  ;;  %1870 = vst [vmem:[#allocation2 + $0x10] sm:$0xff] %v1722_v14   ;;  %2160 = vrcp.f32 %v997_v17  ;;  %v1000_v60 = vadd.f32 1.0, %v2133_v4  ;;  %v959_v24 = vmul.f32 1.442695, %v844_v50  ;;  %v2746_v42 = vadd.f32 %v2495_v40, %v707_v10 }
 0x114   :  { %v2137_v47 = vpop.eup %2136  ;;  %1886 = vst [vmem:[#allocation2 + $0x90] sm:$0xff] %v1802_v15   ;;  %v1123_v18 = vmul.f32 %v2135_v12, %v2579_v3  ;;  %2162 = vrcp.f32 %v1029_v37  ;;  %v810_v54 = vsub.f32 0.0, %v2743_v62  ;;  %v680_v1 = vmul.f32 %v1960_v63, %v2490_v38  ;;  %v1993_v12 = vpop.f32.mrf.mxu1 }
 0x115   :  { %v2139_v19 = vpop.eup %2138  ;;  %v1155_v34 = vmul.f32 %v2137_v47, %v2588_v21  ;;  %2164 = vrcp.f32 %v1000_v60  ;;  %v842_v20 = vsub.f32 0.0, %v2746_v42  ;;  %v712_v13 = vmul.f32 %v1992_v7, %v2490_v38 }
 0x116   :  { %v2141_v27 = vpop.eup %2140  ;;  %v1121_v35 = vmul.f32 %v2139_v19, %v2591_v22  ;;  %2166 = vpow2.f32 %v2704_v48  ;;  %v891_v3 = vmul.f32 1.442695, %v810_v54  ;;  %v2757_v33 = vadd.f32 %v2495_v40, %v680_v1 }
 0x117   :  { %v2143_v0 = vpop.eup %2142  ;;  %v1153_v43 = vmul.f32 %v2141_v27, %v2598_v30  ;;  %2168 = vpow2.f32 %v2721_v16  ;;  %v955_v21 = vmul.f32 1.442695, %v842_v20  ;;  %v2762_v36 = vadd.f32 %v2495_v40, %v712_v13  ;;  %v1961_v16 = vpop.f32.mrf.mxu0 }
 0x118   :  { %v2145_v45 = vpop.eup %2144  ;;  %v1032_v52 = vadd.f32 1.0, %v2143_v0  ;;  %2170 = vpow2.f32 %v889_v31  ;;  %v815_v22 = vsub.f32 0.0, %v2757_v33  ;;  %v678_v48 = vmul.f32 %v2490_v38, %v476_v23  ;;  %v607_v27 = vpop.f32.mrf.mxu1 }
 0x119   :  { %v2147_v56 = vpop.eup %2146  ;;  %v1124_v51 = vmul.f32 %v2145_v45, %v2608_v53  ;;  %2172 = vpow2.f32 %v953_v2  ;;  %v847_v10 = vsub.f32 0.0, %v2762_v36  ;;  %v710_v30 = vmul.f32 %v2490_v38, %v604_v41 }
 0x11a   :  { %v2149_v57 = vpop.eup %2148  ;;  %v1156_v14 = vmul.f32 %v2147_v56, %v2611_v58  ;;  %2174 = vrcp.f32 %v1032_v52  ;;  %v901_v17 = vmul.f32 1.442695, %v815_v22  ;;  %v2771_v31 = vadd.f32 %v2495_v40, %v678_v48 }
 0x11b   :  { %v2151_v50 = vpop.eup %2150  ;;  %v1737_v63 = vpack.c.bf16 %v1124_v51, %v1123_v18  ;;  %v1122_v4 = vmul.f32 %v2149_v57, %v2617_v8  ;;  %2176 = vpow2.f32 %v895_v25  ;;  %v965_v53 = vmul.f32 1.442695, %v847_v10  ;;  %v479_v18 = vpop.f32.mrf.mxu0 }
 0x11c   :  { %v2153_v2 = vpop.eup %2152  ;;  %v1817_v15 = vpack.c.bf16 %v1156_v14, %v1155_v34  ;;  %v1154_v37 = vmul.f32 %v2151_v50, %v2629_v28  ;;  %2178 = vpow2.f32 %v959_v24  ;;  %v813_v7 = vsub.f32 0.0, %v2771_v31 }
 0x11d   :  { %v2155_v58 = vpop.eup %2154  ;;  %1873 = vst [vmem:[#allocation2 + $0x28] sm:$0xff] %v1737_v63   ;;  %v1732_v60 = vpack.c.bf16 %v1122_v4, %v1121_v35  ;;  %2180 = vpow2.f32 %v891_v3  ;;  %v2777_v47 = vadd.f32 %v2495_v40, %v710_v30  ;;  %v681_v19 = vmul.f32 %v1961_v16, %v2490_v38  ;;  %v1964_v0 = vpop.f32.mrf.mxu0 }
 0x11e   :  { %v2157_v54 = vpop.eup %2156  ;;  %1889 = vst [vmem:[#allocation2 + $0xa8] sm:$0xff] %v1817_v15   ;;  %v1812_v8 = vpack.c.bf16 %v1154_v37, %v1153_v43  ;;  %2182 = vpow2.f32 %v955_v21  ;;  %v897_v25 = vmul.f32 1.442695, %v813_v7  ;;  %v713_v13 = vmul.f32 %v1993_v12, %v2490_v38  ;;  %v1996_v63 = vpop.f32.mrf.mxu1 }
 0x11f   :  { %v2159_v1 = vpop.eup %2158  ;;  %1872 = vst [vmem:[#allocation2 + $0x20] sm:$0xff] %v1732_v60   ;;  %v998_v28 = vadd.f32 1.0, %v2157_v54  ;;  %2184 = vpow2.f32 %v901_v17  ;;  %v845_v24 = vsub.f32 0.0, %v2777_v47  ;;  %v679_v23 = vmul.f32 %v2490_v38, %v479_v18  ;;  %v492_v4 = vpop.f32.mrf.mxu0 }
 0x120   :  { %v2161_v34 = vpop.eup %2160  ;;  %1888 = vst [vmem:[#allocation2 + $0xa0] sm:$0xff] %v1812_v8   ;;  %v1030_v20 = vadd.f32 1.0, %v2159_v1  ;;  %2186 = vpow2.f32 %v965_v53  ;;  %v2784_v41 = vadd.f32 %v2495_v40, %v681_v19  ;;  %v1127_v21 = vmul.f32 %v2153_v2, %v2632_v29 }
 0x121   :  { %v2163_v35 = vpop.eup %2162  ;;  %2188 = vrcp.f32 %v998_v28  ;;  %v961_v3 = vmul.f32 1.442695, %v845_v24  ;;  %v2788_v45 = vadd.f32 %v2495_v40, %v713_v13  ;;  %v2791_v52 = vadd.f32 %v2495_v40, %v679_v23  ;;  %v620_v28 = vpop.f32.mrf.mxu1 }
 0x122   :  { %v2165_v43 = vpop.eup %2164  ;;  %2190 = vrcp.f32 %v1030_v20  ;;  %v816_v56 = vsub.f32 0.0, %v2784_v41  ;;  %v711_v51 = vmul.f32 %v2490_v38, %v607_v27  ;;  %v1159_v30 = vmul.f32 %v2155_v58, %v2635_v39  ;;  %v1965_v24 = vpop.f32.mrf.mxu0 }
 0x123   :  { %v2167_v22 = vpop.eup %2166  ;;  %v1128_v48 = vmul.f32 %v2165_v43, %v2660_v44  ;;  %2192 = vpow2.f32 %v897_v25  ;;  %v2798_v29 = vmul.f32 %v2161_v34, %v2646_v46  ;;  %v2801_v14 = vmul.f32 %v2163_v35, %v2657_v55 }
 0x124   :  { %v2169_v10 = vpop.eup %2168  ;;  %v1003_v16 = vadd.f32 1.0, %v2167_v22  ;;  %2194 = vpow2.f32 %v961_v3  ;;  %v848_v44 = vsub.f32 0.0, %v2788_v45  ;;  %v903_v15 = vmul.f32 1.442695, %v816_v56 }
 0x125   :  { %v2171_v57 = vpop.eup %2170  ;;  %v1747_v17 = vpack.c.bf16 %v1128_v48, %v1127_v21  ;;  %v1035_v50 = vadd.f32 1.0, %v2169_v10  ;;  %v814_v39 = vsub.f32 0.0, %v2791_v52  ;;  %v2806_v7 = vadd.f32 %v2495_v40, %v711_v51  ;;  %v1997_v10 = vpop.f32.mrf.mxu1 }
 0x126   :  { %v2173_v53 = vpop.eup %2172  ;;  %2196 = vrcp.f32 %v1003_v16  ;;  %v1001_v2 = vadd.f32 1.0, %v2171_v57  ;;  %v684_v55 = vmul.f32 %v1964_v0, %v2490_v38  ;;  %v716_v60 = vmul.f32 %v1996_v63, %v2490_v38 }
 0x127   :  { %v2175_v46 = vpop.eup %2174  ;;  %1875 = vst [vmem:[#allocation2 + $0x38] sm:$0xff] %v1747_v17   ;;  %2198 = vrcp.f32 %v1035_v50  ;;  %v1033_v37 = vadd.f32 1.0, %v2173_v53  ;;  %v682_v18 = vmul.f32 %v2490_v38, %v492_v4  ;;  %v967_v25 = vmul.f32 1.442695, %v848_v44  ;;  %v2829_v17 = vld [vmem:[%s2951_s3] ss:$0 sm:$0xff] }
 0x128   :  { %v2177_v12 = vpop.eup %2176  ;;  %v1160_v58 = vmul.f32 %v2175_v46, %v2664_v32  ;;  %2200 = vrcp.f32 %v1001_v2  ;;  %v2813_v1 = vadd.f32 %v2495_v40, %v684_v55  ;;  %v2816_v32 = vadd.f32 %v2495_v40, %v716_v60  ;;  %v2838_v4 = vld [vmem:[%s2950_s2] ss:$0 sm:$0xff]  ;;  %s2325_s2 = smov [#allocation2]  }
 0x129   :  { %v2179_v54 = vpop.eup %2178  ;;  %2202 = vrcp.f32 %v1033_v37  ;;  %v1004_v8 = vadd.f32 1.0, %v2177_v12  ;;  %v846_v27 = vsub.f32 0.0, %v2806_v7  ;;  %v2820_v35 = vadd.f32 %v2495_v40, %v682_v18  ;;  %s1502_s3 = sshll.u32 %s2325_s2, 4  ;;  %s1503_s3 = int_to_ptr.vmem [resolvable:$true] %s1502_s3 }
 0x12a   :  { %v2181_v19 = vpop.eup %2180  ;;  %v1827_v34 = vpack.c.bf16 %v1160_v58, %v1159_v30  ;;  %v1036_v20 = vadd.f32 1.0, %v2179_v54  ;;  %2204 = vpow2.f32 %v903_v15  ;;  %v899_v43 = vmul.f32 1.442695, %v814_v39  ;;  %v495_v30 = vpop.f32.mrf.mxu0  ;;  %s2302_s9 = scalar_lea.vmem %s1503_s3, 4096  ;;  %p2307_p1 = scmp.lt.s32.totalorder %s1503_s3, %s1503_s3 }
 0x12b   :  { %v2183_v13 = vpop.eup %2182  ;;  %2206 = vrcp.f32 %v1004_v8  ;;  %v1002_v23 = vadd.f32 1.0, %v2181_v19  ;;  %v714_v21 = vmul.f32 %v2490_v38, %v620_v28  ;;  %v819_v56 = vsub.f32 0.0, %v2813_v1  ;;  %v623_v58 = vpop.f32.mrf.mxu1  ;;  %p2303_p0 = scmp.ne.s32.totalorder %s1503_s3, %s2302_s9  ;;  %p2308_p2 = scmp.lt.s32.totalorder %s2302_s9, %s2302_s9 }
 0x12c   :  { %v2185_v3 = vpop.eup %2184  ;;  %1891 = vst [vmem:[#allocation2 + $0xb8] sm:$0xff] %v1827_v34   ;;  %2208 = vrcp.f32 %v1036_v20  ;;  %v1034_v0 = vadd.f32 1.0, %v2183_v13  ;;  %v851_v51 = vsub.f32 0.0, %v2816_v32  ;;  %v817_v57 = vsub.f32 0.0, %v2820_v35  ;;  %v1968_v60 = vpop.f32.mrf.mxu0 }
 0x12d   :  { %v2187_v22 = vpop.eup %2186  ;;  %2210 = vrcp.f32 %v1002_v23  ;;  %v1007_v48 = vadd.f32 1.0, %v2185_v3  ;;  %v2832_v38 = vadd.f32 %v2829_v17, %v714_v21  ;;  %v963_v63 = vmul.f32 1.442695, %v846_v27  ;;  %p2309_p3 = por %p2308_p2, %p2307_p1 }
 0x12e   :  { %v2189_v16 = vpop.eup %2188  ;;  %2212 = vrcp.f32 %v1034_v0  ;;  %v1039_v40 = vadd.f32 1.0, %v2187_v22  ;;  %v685_v53 = vmul.f32 %v2838_v4, %v1965_v24  ;;  %v717_v46 = vmul.f32 %v2838_v4, %v1997_v10 }
 0x12f   :  { %v2191_v50 = vpop.eup %2190  ;;  %v1126_v44 = vmul.f32 %v2189_v16, %v2684_v61  ;;  %2214 = vrcp.f32 %v1007_v48  ;;  %v849_v39 = vsub.f32 0.0, %v2832_v38  ;;  %v909_v55 = vmul.f32 1.442695, %v819_v56  ;;  %v2000_v56 = vpop.f32.mrf.mxu1  ;;  %p2310_p4 = pnand %p2309_p3, %p2303_p0 }
 0x130   :  { %v2193_v2 = vpop.eup %2192  ;;  %v1158_v15 = vmul.f32 %v2191_v50, %v2690_v6  ;;  %2216 = vrcp.f32 %v1039_v40  ;;  %v2846_v12 = vadd.f32 %v2829_v17, %v685_v53  ;;  %v973_v54 = vmul.f32 1.442695, %v851_v51  ;;  %v508_v53 = vpop.f32.mrf.mxu0 }
 0x131   :  { %v2195_v37 = vpop.eup %2194  ;;  %v1742_v61 = vpack.c.bf16 %v1126_v44, %v2798_v29  ;;  %2218 = vpow2.f32 %v967_v25  ;;  %v905_v6 = vmul.f32 1.442695, %v817_v57  ;;  %v2849_v28 = vadd.f32 1.0, %v2193_v2 }
 0x132   :  { %v1822_v18 = vpack.c.bf16 %v1158_v15, %v2801_v14  ;;  %2220 = vpow2.f32 %v899_v43  ;;  %v820_v24 = vsub.f32 0.0, %v2846_v12  ;;  %v2853_v29 = vadd.f32 %v2829_v17, %v717_v46 }
 0x133   :  { %v2197_v8 = vpop.eup %2196  ;;  %1874 = vst [vmem:[#allocation2 + $0x30] sm:$0xff] %v1742_v61   ;;  %v683_v25 = vmul.f32 %v2838_v4, %v495_v30  ;;  %v2856_v34 = vadd.f32 1.0, %v2195_v37  ;;  %v969_v20 = vmul.f32 1.442695, %v849_v39  ;;  %v715_v14 = vmul.f32 %v2838_v4, %v623_v58  ;;  %v636_v37 = vpop.f32.mrf.mxu1 }
 0x134   :  { %v2199_v19 = vpop.eup %2198  ;;  %1890 = vst [vmem:[#allocation2 + $0xb0] sm:$0xff] %v1822_v18   ;;  %v688_v13 = vmul.f32 %v2838_v4, %v1968_v60  ;;  %v1131_v27 = vmul.f32 %v2197_v8, %v2693_v26  ;;  %2222 = vpow2.f32 %v963_v63  ;;  %v852_v0 = vsub.f32 0.0, %v2853_v29 }
 0x135   :  { %v2201_v23 = vpop.eup %2200  ;;  %v1163_v3 = vmul.f32 %v2199_v19, %v2707_v11  ;;  %2224 = vpow2.f32 %v909_v55  ;;  %v911_v21 = vmul.f32 1.442695, %v820_v24  ;;  %v2864_v22 = vadd.f32 %v2829_v17, %v683_v25  ;;  %v1969_v24 = vpop.f32.mrf.mxu0 }
 0x136   :  { %v2203_v43 = vpop.eup %2202  ;;  %v2867_v48 = vadd.f32 %v2829_v17, %v715_v14  ;;  %v1129_v10 = vmul.f32 %v2201_v23, %v2715_v5  ;;  %2226 = vpow2.f32 %v973_v54  ;;  %v975_v26 = vmul.f32 1.442695, %v852_v0 }
 0x137   :  { %v2205_v51 = vpop.eup %2204  ;;  %v2871_v11 = vadd.f32 %v2829_v17, %v688_v13  ;;  %2228 = vpow2.f32 %v905_v6  ;;  %v818_v40 = vsub.f32 0.0, %v2864_v22  ;;  %v1161_v44 = vmul.f32 %v2203_v43, %v2719_v49 }
 0x138   :  { %v2207_v30 = vpop.eup %2206  ;;  %v1008_v16 = vadd.f32 1.0, %v2205_v51  ;;  %v850_v57 = vsub.f32 0.0, %v2867_v48  ;;  %2230 = vpow2.f32 %v969_v20  ;;  %v720_v5 = vmul.f32 %v2838_v4, %v2000_v56  ;;  %v2001_v20 = vpop.f32.mrf.mxu1 }
 0x139   :  { %v2209_v50 = vpop.eup %2208  ;;  %v1132_v63 = vmul.f32 %v2207_v30, %v2726_v59  ;;  %v907_v39 = vmul.f32 1.442695, %v818_v40  ;;  %v823_v49 = vsub.f32 0.0, %v2871_v11  ;;  %v686_v8 = vmul.f32 %v2838_v4, %v508_v53 }
 0x13a   :  { %v2211_v2 = vpop.eup %2210  ;;  %v1164_v15 = vmul.f32 %v2209_v50, %v2732_v9  ;;  %2232 = vrcp.f32 %v1008_v16  ;;  %v971_v46 = vmul.f32 1.442695, %v850_v57  ;;  %v2883_v54 = vadd.f32 %v2829_v17, %v720_v5 }
 0x13b   :  { %v2213_v61 = vpop.eup %2212  ;;  %v1757_v55 = vpack.c.bf16 %v1132_v63, %v1131_v27  ;;  %v1130_v58 = vmul.f32 %v2211_v2, %v2743_v62  ;;  %2234 = vpow2.f32 %v911_v21  ;;  %v917_v13 = vmul.f32 1.442695, %v823_v49  ;;  %v511_v21 = vpop.f32.mrf.mxu0 }
 0x13c   :  { %v2215_v60 = vpop.eup %2214  ;;  %v1837_v59 = vpack.c.bf16 %v1164_v15, %v1163_v3  ;;  %v1162_v18 = vmul.f32 %v2213_v61, %v2746_v42  ;;  %2236 = vpow2.f32 %v975_v26  ;;  %v855_v19 = vsub.f32 0.0, %v2883_v54 }
 0x13d   :  { %v2885_v9 = vpop.eup %2216  ;;  %1877 = vst [vmem:[#allocation2 + $0x48] sm:$0xff] %v1757_v55   ;;  %v1752_v6 = vpack.c.bf16 %v1130_v58, %v1129_v10  ;;  %2238 = vpow2.f32 %v907_v39  ;;  %v2891_v23 = vadd.f32 %v2829_v17, %v686_v8  ;;  %v718_v0 = vmul.f32 %v2838_v4, %v636_v37  ;;  %v639_v10 = vpop.f32.mrf.mxu1 }
 0x13e   :  { %v2219_v62 = vpop.eup %2218  ;;  %1893 = vst [vmem:[#allocation2 + $0xc8] sm:$0xff] %v1837_v59   ;;  %v1832_v25 = vpack.c.bf16 %v1162_v18, %v1161_v44  ;;  %2240 = vpow2.f32 %v971_v46  ;;  %v981_v3 = vmul.f32 1.442695, %v855_v19  ;;  %v689_v43 = vmul.f32 %v2838_v4, %v1969_v24 }
 0x13f   :  { %v2221_v42 = vpop.eup %2220  ;;  %1876 = vst [vmem:[#allocation2 + $0x40] sm:$0xff] %v1752_v6   ;;  %2242 = vrcp.f32 %v2849_v28  ;;  %v1040_v14 = vadd.f32 1.0, %v2219_v62  ;;  %v821_v28 = vsub.f32 0.0, %v2891_v23  ;;  %v721_v51 = vmul.f32 %v2838_v4, %v2001_v20 }
 0x140   :  { %1892 = vst [vmem:[#allocation2 + $0xc0] sm:$0xff] %v1832_v25   ;;  %2244 = vrcp.f32 %v2856_v34  ;;  %v1006_v27 = vadd.f32 1.0, %v2221_v42  ;;  %v2899_v40 = vadd.f32 %v2829_v17, %v718_v0  ;;  %v687_v57 = vmul.f32 %v2838_v4, %v511_v21 }
 0x141   :  { %2246 = vrcp.f32 %v1040_v14  ;;  %v2223_v56 = vpop.eup %2222  ;;  %v2903_v63 = vadd.f32 %v2829_v17, %v689_v43  ;;  %v719_v5 = vmul.f32 %v2838_v4, %v639_v10  ;;  %v913_v15 = vmul.f32 1.442695, %v821_v28 }
 0x142   :  { %2248 = vrcp.f32 %v1006_v27  ;;  %v2225_v26 = vpop.eup %2224  ;;  %v1038_v30 = vadd.f32 1.0, %v2223_v56  ;;  %v2907_v39 = vadd.f32 %v2829_v17, %v721_v51  ;;  %v1135_v37 = vmul.f32 %v2215_v60, %v2757_v33 }
 0x143   :  { %2250 = vpow2.f32 %v917_v13  ;;  %v2227_v16 = vpop.eup %2226  ;;  %v1011_v34 = vadd.f32 1.0, %v2225_v26  ;;  %v853_v49 = vsub.f32 0.0, %v2899_v40  ;;  %v2913_v4 = vadd.f32 %v2829_v17, %v687_v57 }
 0x144   :  { %2252 = vpow2.f32 %v981_v3  ;;  %v2229_v50 = vpop.eup %2228  ;;  %v1043_v44 = vadd.f32 1.0, %v2227_v16  ;;  %v824_v6 = vsub.f32 0.0, %v2903_v63  ;;  %v2917_v8 = vadd.f32 %v2829_v17, %v719_v5 }
 0x145   :  { %2254 = vrcp.f32 %v1038_v30  ;;  %v2231_v53 = vpop.eup %2230  ;;  %v1009_v2 = vadd.f32 1.0, %v2229_v50  ;;  %v977_v42 = vmul.f32 1.442695, %v853_v49  ;;  %v822_v14 = vsub.f32 0.0, %v2913_v4 }
 0x146   :  { %2256 = vrcp.f32 %v1011_v34  ;;  %v1041_v61 = vadd.f32 1.0, %v2231_v53  ;;  %v919_v17 = vmul.f32 1.442695, %v824_v6  ;;  %v854_v27 = vsub.f32 0.0, %v2917_v8 }
 0x147   :  { %v2233_v46 = vpop.eup %2232  ;;  %2258 = vrcp.f32 %v1043_v44  ;;  %v1167_v21 = vmul.f32 %v2885_v9, %v2762_v36  ;;  %v915_v26 = vmul.f32 1.442695, %v822_v14 }
 0x148   :  { %v2235_v55 = vpop.eup %2234  ;;  %v1136_v58 = vmul.f32 %v2233_v46, %v2784_v41  ;;  %2260 = vrcp.f32 %v1009_v2  ;;  %v856_v41 = vsub.f32 0.0, %v2907_v39  ;;  %v979_v34 = vmul.f32 1.442695, %v854_v27 }
 0x149   :  { %v2237_v59 = vpop.eup %2236  ;;  %2262 = vrcp.f32 %v1041_v61  ;;  %v1012_v18 = vadd.f32 1.0, %v2235_v55 }
 0x14a   :  { %v2239_v33 = vpop.eup %2238  ;;  %v1767_v60 = vpack.c.bf16 %v1136_v58, %v1135_v37  ;;  %v1044_v24 = vadd.f32 1.0, %v2237_v59  ;;  %2264 = vpow2.f32 %v913_v15  ;;  %v983_v0 = vmul.f32 1.442695, %v856_v41 }
 0x14b   :  { %v2241_v62 = vpop.eup %2240  ;;  %2266 = vrcp.f32 %v1012_v18  ;;  %v1010_v25 = vadd.f32 1.0, %v2239_v33 }
 0x14c   :  { %v2243_v19 = vpop.eup %2242  ;;  %1879 = vst [vmem:[#allocation2 + $0x58] sm:$0xff] %v1767_v60   ;;  %2268 = vrcp.f32 %v1044_v24  ;;  %v1042_v20 = vadd.f32 1.0, %v2241_v62 }
 0x14d   :  { %v2245_v13 = vpop.eup %2244  ;;  %2270 = vrcp.f32 %v1010_v25  ;;  %v1133_v51 = vmul.f32 %v2243_v19, %v2771_v31 }
 0x14e   :  { %v2247_v3 = vpop.eup %2246  ;;  %2272 = vrcp.f32 %v1042_v20  ;;  %v1165_v5 = vmul.f32 %v2245_v13, %v2777_v47 }
 0x14f   :  { %v2249_v43 = vpop.eup %2248  ;;  %v1168_v56 = vmul.f32 %v2247_v3, %v2788_v45  ;;  %2274 = vpow2.f32 %v977_v42 }
 0x150   :  { %v2251_v28 = vpop.eup %2250  ;;  %v1134_v10 = vmul.f32 %v2249_v43, %v2791_v52  ;;  %2276 = vpow2.f32 %v919_v17 }
 0x151   :  { %v2253_v30 = vpop.eup %2252  ;;  %v1847_v16 = vpack.c.bf16 %v1168_v56, %v1167_v21  ;;  %2278 = vpow2.f32 %v983_v0  ;;  %v1015_v55 = vadd.f32 1.0, %v2251_v28 }
 0x152   :  { %v2255_v57 = vpop.eup %2254  ;;  %v1762_v50 = vpack.c.bf16 %v1134_v10, %v1133_v51  ;;  %2280 = vpow2.f32 %v915_v26  ;;  %v1047_v6 = vadd.f32 1.0, %v2253_v30 }
 0x153   :  { %v2257_v44 = vpop.eup %2256  ;;  %1895 = vst [vmem:[#allocation2 + $0xd8] sm:$0xff] %v1847_v16   ;;  %v1166_v36 = vmul.f32 %v2255_v57, %v2806_v7  ;;  %2282 = vpow2.f32 %v979_v34 }
 0x154   :  { %v2259_v45 = vpop.eup %2258  ;;  %1878 = vst [vmem:[#allocation2 + $0x50] sm:$0xff] %v1762_v50   ;;  %v1139_v46 = vmul.f32 %v2257_v44, %v2813_v1  ;;  %2284 = vrcp.f32 %v1015_v55 }
 0x155   :  { %v2261_v31 = vpop.eup %2260  ;;  %v1842_v52 = vpack.c.bf16 %v1166_v36, %v1165_v5  ;;  %v1171_v47 = vmul.f32 %v2259_v45, %v2816_v32  ;;  %2286 = vrcp.f32 %v1047_v6 }
 0x156   :  { %v2263_v9 = vpop.eup %2262  ;;  %v1137_v49 = vmul.f32 %v2261_v31, %v2820_v35 }
 0x157   :  { %v2265_v53 = vpop.eup %2264  ;;  %1894 = vst [vmem:[#allocation2 + $0xd0] sm:$0xff] %v1842_v52   ;;  %v1169_v33 = vmul.f32 %v2263_v9, %v2832_v38 }
 0x158   :  { %v2267_v2 = vpop.eup %2266  ;;  %v1013_v24 = vadd.f32 1.0, %v2265_v53 }
 0x159   :  { %v2269_v15 = vpop.eup %2268  ;;  %v1140_v37 = vmul.f32 %v2267_v2, %v2846_v12 }
 0x15a   :  { %v2271_v61 = vpop.eup %2270  ;;  %v1172_v7 = vmul.f32 %v2269_v15, %v2853_v29  ;;  %2288 = vrcp.f32 %v1013_v24 }
 0x15b   :  { %v2273_v58 = vpop.eup %2272  ;;  %v1777_v59 = vpack.c.bf16 %v1140_v37, %v1139_v46  ;;  %v1138_v18 = vmul.f32 %v2271_v61, %v2864_v22 }
 0x15c   :  { %v1857_v60 = vpack.c.bf16 %v1172_v7, %v1171_v47  ;;  %v1170_v1 = vmul.f32 %v2273_v58, %v2867_v48  ;;  %v2275_v12 = vpop.eup %2274 }
 0x15d   :  { %1881 = vst [vmem:[#allocation2 + $0x68] sm:$0xff] %v1777_v59   ;;  %v1772_v41 = vpack.c.bf16 %v1138_v18, %v1137_v49  ;;  %v2277_v32 = vpop.eup %2276  ;;  %v1045_v35 = vadd.f32 1.0, %v2275_v12 }
 0x15e   :  { %1897 = vst [vmem:[#allocation2 + $0xe8] sm:$0xff] %v1857_v60   ;;  %v1852_v29 = vpack.c.bf16 %v1170_v1, %v1169_v33  ;;  %v2279_v62 = vpop.eup %2278  ;;  %v1016_v25 = vadd.f32 1.0, %v2277_v32 }
 0x15f   :  { %1880 = vst [vmem:[#allocation2 + $0x60] sm:$0xff] %v1772_v41   ;;  %v1048_v22 = vadd.f32 1.0, %v2279_v62  ;;  %v2281_v38 = vpop.eup %2280 }
 0x160   :  { %1896 = vst [vmem:[#allocation2 + $0xe0] sm:$0xff] %v1852_v29   ;;  %2290 = vrcp.f32 %v1016_v25  ;;  %v2283_v19 = vpop.eup %2282  ;;  %v1014_v48 = vadd.f32 1.0, %v2281_v38 }
 0x161   :  { %2292 = vrcp.f32 %v1048_v22  ;;  %v1046_v20 = vadd.f32 1.0, %v2283_v19  ;;  %v2285_v42 = vpop.eup %2284 }
 0x162   :  { %2294 = vrcp.f32 %v1045_v35  ;;  %v2287_v14 = vpop.eup %2286  ;;  %v1143_v3 = vmul.f32 %v2285_v42, %v2871_v11 }
 0x163   :  { %2296 = vrcp.f32 %v1014_v48  ;;  %v1175_v21 = vmul.f32 %v2287_v14, %v2883_v54 }
 0x164   :  { %2298 = vrcp.f32 %v1046_v20 }
 0x167   :  { %v2289_v13 = vpop.eup %2288 }
 0x168   :  { %v1141_v26 = vmul.f32 %v2289_v13, %v2891_v23 }
 0x16d   :  { %v2291_v17 = vpop.eup %2290 }
 0x16e   :  { %v2293_v27 = vpop.eup %2292  ;;  %v1144_v0 = vmul.f32 %v2291_v17, %v2903_v63 }
 0x16f   :  { %v2295_v43 = vpop.eup %2294  ;;  %v1176_v56 = vmul.f32 %v2293_v27, %v2907_v39 }
 0x170   :  { %v2297_v28 = vpop.eup %2296  ;;  %v1787_v51 = vpack.c.bf16 %v1144_v0, %v1143_v3  ;;  %v1173_v34 = vmul.f32 %v2295_v43, %v2899_v40 }
 0x171   :  { %v2299_v10 = vpop.eup %2298  ;;  %v1867_v30 = vpack.c.bf16 %v1176_v56, %v1175_v21  ;;  %v1142_v16 = vmul.f32 %v2297_v28, %v2913_v4 }
 0x172   :  { %1883 = vst [vmem:[#allocation2 + $0x78] sm:$0xff] %v1787_v51   ;;  %v1174_v11 = vmul.f32 %v2299_v10, %v2917_v8 }
 0x173   :  { %1899 = vst [vmem:[#allocation2 + $0xf8] sm:$0xff] %v1867_v30   ;;  %v1782_v63 = vpack.c.bf16 %v1142_v16, %v1141_v26 }
 0x174   :  { %v1862_v54 = vpack.c.bf16 %v1174_v11, %v1173_v34 }
 0x175   :  { %1882 = vst [vmem:[#allocation2 + $0x70] sm:$0xff] %v1782_v63  }
 0x176   :  { %1898 = vst [vmem:[#allocation2 + $0xf0] sm:$0xff] %v1862_v54  }
 0x177   :  { %2313 = shalt.err (!%p2310_p4)
}
 0x178   :  { %s2326_s10 = smov 64   ;;  %s2327_s11 = smov 4  }
 0x179   :  { %1508 = dma.vmem_to_hbm [thread:$0]  %s1503_s3, 4096, %s2952_s4, [#allocation3], %s2326_s10, %s2326_s10, %s2327_s11  }
 0x17a   :  { %2322 = dma.done.wait [#allocation3], 4096  }
 0x17b   :  { %2323 = vsyncadd [#allocation3], 4294963200 }
 0x17c   :  { %1512 = vsyncpa [#allocation3], 1 }

</bundles_post_ra>
